<compile_context>
chip_gen: v5e
topology: v5e:2x2
jax: 0.10.0
libtpu: 0.0.40
codegen_flags: <defaults>
</compile_context>

<pallas_src>
import functools

import jax
import jax.numpy as jnp
from jax import lax
from jax.experimental import pallas as pl
from jax.experimental.pallas import tpu as pltpu

IGNORE_INDEX = -100
_LANE = 128


def _round_up(x: int, m: int) -> int:
    return ((x + m - 1) // m) * m


def _ce_kernel(targets_ref, logits_ref, loss_ref, m_sc, l_sc, t_sc,
               *, tc: int, num_classes: int, needs_class_mask: bool):
    """One (TN, TC) tile of the streaming cross-entropy.

    targets_ref: (TN, 1)  int32   (constant across the class-tile axis)
    logits_ref : (TN, TC) float   (streamed class tiles; edge tiles ragged)
    loss_ref   : (TN, 1)  float32 per-row, valid-masked -log p[target]
    m_sc/l_sc/t_sc: (TN, 1) f32 running max / running sum-exp / target logit
    """
    j = pl.program_id(1)  # class-tile index (reduction axis, innermost)

    @pl.when(j == 0)
    def _init():
        m_sc[...] = jnp.full_like(m_sc, -jnp.inf)
        l_sc[...] = jnp.zeros_like(l_sc)
        t_sc[...] = jnp.zeros_like(t_sc)

    t = targets_ref[...]                              # (TN, 1) int32
    # Per-tile upcast to f32 for the exp/accumulate path (HBM traffic stays at
    # the input dtype).
    # TODO(synk): on v6e/v7x a bf16 exp path (f32 accumulation) would halve
    # vreg pressure and double EUP throughput for bf16 inputs.
    x = logits_ref[...].astype(jnp.float32)           # (TN, TC)

    # Global class ids of this tile's columns.
    cls_ids = lax.broadcasted_iota(jnp.int32, x.shape, 1) + j * tc
    if needs_class_mask:
        # Mask the ragged / out-of-vocab columns (garbage in edge blocks) so
        # they contribute nothing.
        x = jnp.where(cls_ids < num_classes, x, -jnp.inf)

    # --- online log-sum-exp over the class axis ---
    tile_max = jnp.max(x, axis=-1, keepdims=True)     # (TN, 1)
    m_new = jnp.maximum(m_sc[...], tile_max)
    alpha = jnp.exp(m_sc[...] - m_new)                # rescale old sum-exp
    p = jnp.exp(x - m_new)                            # (TN, TC)
    l_sc[...] = alpha * l_sc[...] + jnp.sum(p, axis=-1, keepdims=True)
    m_sc[...] = m_new

    # --- target-logit pick (nonzero in exactly one class tile per valid row) ---
    onehot = cls_ids == t                             # (TN, TC) bool
    t_sc[...] += jnp.sum(jnp.where(onehot, x, 0.0), axis=-1, keepdims=True)

    @pl.when(j == pl.num_programs(1) - 1)
    def _finalize():
        valid = t != IGNORE_INDEX                     # (TN, 1) bool
        lse = m_sc[...] + jnp.log(l_sc[...])
        per_row = lse - t_sc[...]                     # -log p[target]
        loss_ref[...] = jnp.where(valid, per_row, 0.0)


def cross_entropy_loss(logits: jax.Array, targets: jax.Array,
                       *, tn: int | None = None, tc: int | None = None) -> jax.Array:
    """Pallas implementation of nn.CrossEntropyLoss()(logits, targets)."""
    assert logits.ndim == 2, "expected (N, C) logits with class-index targets"
    n, c = logits.shape
    itemsize = jnp.dtype(logits.dtype).itemsize
    # Native sublane tile depends on packing: f32 -> 8, bf16 -> 16, int8/fp8 -> 32.
    sublane = {4: 8, 2: 16, 1: 32}.get(itemsize, 8)

    # Tile selection: lane-dense class tile, sublane-aligned row tile.
    if tc is None:
        tc = min(_round_up(c, _LANE), 2048)
    if tn is None:
        tn = min(_round_up(n, sublane), 256)
    assert tc % _LANE == 0 and tn % sublane == 0

    n_pad = _round_up(n, tn)

    # Only the tiny targets vector is padded (ignore_index for rows beyond N,
    # which neutralizes the garbage rows of ragged logits edge blocks).
    t32 = targets.astype(jnp.int32)
    t_padded = t32
    if n_pad != n:
        t_padded = jnp.pad(t32, (0, n_pad - n), constant_values=IGNORE_INDEX)
    targets_2d = t_padded.reshape(n_pad, 1)

    grid = (n_pad // tn, pl.cdiv(c, tc))
    kernel = functools.partial(
        _ce_kernel, tc=tc, num_classes=c, needs_class_mask=(c % tc != 0))

    cost = pl.CostEstimate(
        flops=6 * n * c,                       # max/sub/cmp/select/add per element
        transcendentals=n * c + 2 * n,         # exp per element + log/exp per row
        bytes_accessed=n * c * itemsize + 2 * n * 4,
    )

    per_row = pl.pallas_call(
        kernel,
        out_shape=jax.ShapeDtypeStruct((n_pad, 1), jnp.float32),
        grid_spec=pltpu.PrefetchScalarGridSpec(
            num_scalar_prefetch=0,
            grid=grid,
            in_specs=[
                # Targets: index_map ignores the class axis -> DMA'd once per row tile.
                pl.BlockSpec((tn, 1), lambda i, j: (i, 0)),
                # Logits: lane-dense streamed class tiles (edge blocks ragged).
                pl.BlockSpec((tn, tc), lambda i, j: (i, j)),
            ],
            out_specs=pl.BlockSpec((tn, 1), lambda i, j: (i, 0)),
            scratch_shapes=[
                pltpu.VMEM((tn, 1), jnp.float32),   # running max
                pltpu.VMEM((tn, 1), jnp.float32),   # running sum of exp
                pltpu.VMEM((tn, 1), jnp.float32),   # running target logit
            ],
        ),
        compiler_params=pltpu.CompilerParams(
            dimension_semantics=("parallel", "arbitrary"),
            vmem_limit_bytes=48 * 1024 * 1024,      # headroom on v7x's 64 MiB VMEM
        ),
        cost_estimate=cost,
    )(targets_2d, logits)

    # Tiny finalization: padded / ignored rows already contribute 0.
    count = jnp.sum((t32 != IGNORE_INDEX).astype(jnp.float32))
    # NOTE: count == 0 (all targets ignored) yields 0/0 = NaN, same as PyTorch.
    return jnp.sum(per_row) / count


def _reference(logits, targets):
    """Pure-JAX reference with torch-default CrossEntropyLoss semantics."""
    logp = jax.nn.log_softmax(logits.astype(jnp.float32), axis=-1)
    valid = targets != IGNORE_INDEX
    safe_t = jnp.where(valid, targets, 0).astype(jnp.int32)
    nll = -jnp.take_along_axis(logp, safe_t[:, None], axis=-1)[:, 0]
    return jnp.sum(jnp.where(valid, nll, 0.0)) / jnp.sum(valid.astype(jnp.float32))


if __name__ == "__main__":
    key = jax.random.PRNGKey(0)
    k1, k2, k3, k4, k5, k6, k7, k8 = jax.random.split(key, 8)

    # Case 1: small batch, single tile, exercises ignore_index.
    N, C = 8, 32
    logits = jax.random.normal(k1, (N, C), dtype=jnp.float32)
    targets = jax.random.randint(k2, (N,), 0, C, dtype=jnp.int32)
    targets = targets.at[3].set(IGNORE_INDEX)
    loss = cross_entropy_loss(logits, targets)
    jax.block_until_ready(loss)
    ref = _reference(logits, targets)
    assert jnp.allclose(loss, ref, atol=1e-5, rtol=1e-5), (loss, ref)

    # Case 2: force small tiles so the multi-tile streaming path (online LSE
    # across class tiles, multiple row tiles, ragged vocab columns) is tested.
    N2, C2 = 24, 300
    logits2 = jax.random.normal(k3, (N2, C2), dtype=jnp.float32)
    targets2 = jax.random.randint(k4, (N2,), 0, C2, dtype=jnp.int32)
    targets2 = targets2.at[5].set(IGNORE_INDEX)
    loss2 = cross_entropy_loss(logits2, targets2, tn=8, tc=128)  # grid (3, 3)
    jax.block_until_ready(loss2)
    ref2 = _reference(logits2, targets2)
    assert jnp.allclose(loss2, ref2, atol=1e-5, rtol=1e-5), (loss2, ref2)

    # Case 3: ragged row count (N not a multiple of the sublane tile) -> the
    # logits edge block overhangs in rows; padded targets mask them.
    N3, C3 = 10, 256
    logits3 = jax.random.normal(k5, (N3, C3), dtype=jnp.float32)
    targets3 = jax.random.randint(k6, (N3,), 0, C3, dtype=jnp.int32)
    loss3 = cross_entropy_loss(logits3, targets3)
    jax.block_until_ready(loss3)
    ref3 = _reference(logits3, targets3)
    assert jnp.allclose(loss3, ref3, atol=1e-5, rtol=1e-5), (loss3, ref3)

    # Case 4: bf16 logits (per-tile upcast path, 16-row sublane tile).
    N4, C4 = 16, 160
    logits4 = jax.random.normal(k7, (N4, C4), dtype=jnp.bfloat16)
    targets4 = jax.random.randint(k8, (N4,), 0, C4, dtype=jnp.int32)
    targets4 = targets4.at[0].set(IGNORE_INDEX)
    loss4 = cross_entropy_loss(logits4, targets4)
    jax.block_until_ready(loss4)
    ref4 = _reference(logits4, targets4)
    assert jnp.allclose(loss4, ref4, atol=2e-3, rtol=2e-3), (loss4, ref4)

    print("KERNEL_OK")
</pallas_src>

<mosaic_0001>
module attributes {stable_mosaic.version = 11 : i64} {
  func.func @_ce_kernel(%arg0: i32, %arg1: i32, %arg2: memref<8x1xi32, #tpu.memory_space<vmem>>, %arg3: memref<8x128xf32, #tpu.memory_space<vmem>>, %arg4: memref<8x1xf32, #tpu.memory_space<vmem>>, %arg5: memref<8x1xf32, #tpu.memory_space<vmem>>, %arg6: memref<8x1xf32, #tpu.memory_space<vmem>>, %arg7: memref<8x1xf32, #tpu.memory_space<vmem>>) attributes {dimension_semantics = [#tpu.dimension_semantics<parallel>, #tpu.dimension_semantics<arbitrary>], iteration_bounds = array<i64: 1, 1>, scalar_prefetch = 0 : i64, scratch_operands = 3 : i64, tpu.core_type = #tpu.core_type<tc>, window_params = [{transform_indices = @transform_0, window_bounds = array<i64: 8, 1>}, {transform_indices = @transform_1, window_bounds = array<i64: 8, 128>}, {transform_indices = @transform_2, window_bounds = array<i64: 8, 1>}]} {
    %c0_i32 = arith.constant 0 : i32
    %0 = arith.cmpi eq, %arg1, %c0_i32 : i32
    %1 = arith.extui %0 : i1 to i32
    %c0_i32_0 = arith.constant 0 : i32
    %2 = arith.cmpi ne, %1, %c0_i32_0 : i32
    scf.if %2 {
      %cst_24 = arith.constant 0xFF800000 : f32
      %42 = vector.broadcast %cst_24 : f32 to vector<8x1xf32>
      %c0_25 = arith.constant 0 : index
      %c0_26 = arith.constant 0 : index
      %43 = vector.load %arg5[%c0_25, %c0_26] : memref<8x1xf32, #tpu.memory_space<vmem>>, vector<8x1xf32>
      tpu.vector_store %arg5[%c0_25, %c0_26], %42 {strides = array<i32>} : memref<8x1xf32, #tpu.memory_space<vmem>>, vector<8x1xf32>,
      %cst_27 = arith.constant 0.000000e+00 : f32
      %44 = vector.broadcast %cst_27 : f32 to vector<8x1xf32>
      %c0_28 = arith.constant 0 : index
      %c0_29 = arith.constant 0 : index
      %45 = vector.load %arg6[%c0_28, %c0_29] : memref<8x1xf32, #tpu.memory_space<vmem>>, vector<8x1xf32>
      tpu.vector_store %arg6[%c0_28, %c0_29], %44 {strides = array<i32>} : memref<8x1xf32, #tpu.memory_space<vmem>>, vector<8x1xf32>,
      %cst_30 = arith.constant 0.000000e+00 : f32
      %46 = vector.broadcast %cst_30 : f32 to vector<8x1xf32>
      %c0_31 = arith.constant 0 : index
      %c0_32 = arith.constant 0 : index
      %47 = vector.load %arg7[%c0_31, %c0_32] : memref<8x1xf32, #tpu.memory_space<vmem>>, vector<8x1xf32>
      tpu.vector_store %arg7[%c0_31, %c0_32], %46 {strides = array<i32>} : memref<8x1xf32, #tpu.memory_space<vmem>>, vector<8x1xf32>,
    } else {
    }
    %c0 = arith.constant 0 : index
    %c0_1 = arith.constant 0 : index
    %3 = vector.load %arg2[%c0, %c0_1] : memref<8x1xi32, #tpu.memory_space<vmem>>, vector<8x1xi32>
    %c0_2 = arith.constant 0 : index
    %c0_3 = arith.constant 0 : index
    %4 = vector.load %arg3[%c0_2, %c0_3] : memref<8x128xf32, #tpu.memory_space<vmem>>, vector<8x128xf32>
    %5 = tpu.iota {dimensions = array<i32: 1>} : vector<8x128xi32>
    %c128_i32 = arith.constant 128 : i32
    %6 = arith.muli %arg1, %c128_i32 : i32
    %7 = vector.broadcast %6 : i32 to vector<8x128xi32>
    %8 = arith.addi %5, %7 : vector<8x128xi32>
    %c32_i32 = arith.constant 32 : i32
    %9 = vector.broadcast %c32_i32 : i32 to vector<8x128xi32>
    %10 = arith.cmpi slt, %8, %9 : vector<8x128xi32>
    %cst = arith.constant 0xFF800000 : f32
    %11 = vector.broadcast %cst : f32 to vector<8x128xf32>
    %12 = arith.select %10, %4, %11 : vector<8x128xi1>, vector<8x128xf32>
    %cst_4 = arith.constant dense<0xFF800000> : vector<8xf32>
    %13 = vector.multi_reduction <maximumf>, %12, %cst_4 [1] : vector<8x128xf32> to vector<8xf32>
    %14 = vector.shape_cast %13 : vector<8xf32> to vector<8x1xf32>
    %c0_5 = arith.constant 0 : index
    %c0_6 = arith.constant 0 : index
    %15 = vector.load %arg5[%c0_5, %c0_6] : memref<8x1xf32, #tpu.memory_space<vmem>>, vector<8x1xf32>
    %16 = arith.maximumf %15, %14 : vector<8x1xf32>
    %c0_7 = arith.constant 0 : index
    %c0_8 = arith.constant 0 : index
    %17 = vector.load %arg5[%c0_7, %c0_8] : memref<8x1xf32, #tpu.memory_space<vmem>>, vector<8x1xf32>
    %18 = arith.subf %17, %16 : vector<8x1xf32>
    %19 = math.exp %18 : vector<8x1xf32>
    %20 = vector.broadcast %16 : vector<8x1xf32> to vector<8x128xf32>
    %21 = arith.subf %12, %20 : vector<8x128xf32>
    %22 = math.exp %21 : vector<8x128xf32>
    %c0_9 = arith.constant 0 : index
    %c0_10 = arith.constant 0 : index
    %23 = vector.load %arg6[%c0_9, %c0_10] : memref<8x1xf32, #tpu.memory_space<vmem>>, vector<8x1xf32>
    %24 = arith.mulf %19, %23 : vector<8x1xf32>
    %cst_11 = arith.constant dense<0.000000e+00> : vector<8xf32>
    %25 = vector.multi_reduction <add>, %22, %cst_11 [1] : vector<8x128xf32> to vector<8xf32>
    %26 = vector.shape_cast %25 : vector<8xf32> to vector<8x1xf32>
    %27 = arith.addf %24, %26 : vector<8x1xf32>
    %c0_12 = arith.constant 0 : index
    %c0_13 = arith.constant 0 : index
    %28 = vector.load %arg6[%c0_12, %c0_13] : memref<8x1xf32, #tpu.memory_space<vmem>>, vector<8x1xf32>
    tpu.vector_store %arg6[%c0_12, %c0_13], %27 {strides = array<i32>} : memref<8x1xf32, #tpu.memory_space<vmem>>, vector<8x1xf32>,
    %c0_14 = arith.constant 0 : index
    %c0_15 = arith.constant 0 : index
    %29 = vector.load %arg5[%c0_14, %c0_15] : memref<8x1xf32, #tpu.memory_space<vmem>>, vector<8x1xf32>
    tpu.vector_store %arg5[%c0_14, %c0_15], %16 {strides = array<i32>} : memref<8x1xf32, #tpu.memory_space<vmem>>, vector<8x1xf32>,
    %30 = vector.broadcast %3 : vector<8x1xi32> to vector<8x128xi32>
    %31 = arith.cmpi eq, %8, %30 : vector<8x128xi32>
    %c0_16 = arith.constant 0 : index
    %c0_17 = arith.constant 0 : index
    %32 = vector.load %arg7[%c0_16, %c0_17] : memref<8x1xf32, #tpu.memory_space<vmem>>, vector<8x1xf32>
    %cst_18 = arith.constant 0.000000e+00 : f32
    %33 = vector.broadcast %cst_18 : f32 to vector<8x128xf32>
    %34 = arith.select %31, %12, %33 : vector<8x128xi1>, vector<8x128xf32>
    %cst_19 = arith.constant dense<0.000000e+00> : vector<8xf32>
    %35 = vector.multi_reduction <add>, %34, %cst_19 [1] : vector<8x128xf32> to vector<8xf32>
    %36 = vector.shape_cast %35 : vector<8xf32> to vector<8x1xf32>
    %37 = arith.addf %32, %36 : vector<8x1xf32>
    %c0_20 = arith.constant 0 : index
    %c0_21 = arith.constant 0 : index
    %38 = vector.load %arg7[%c0_20, %c0_21] : memref<8x1xf32, #tpu.memory_space<vmem>>, vector<8x1xf32>
    tpu.vector_store %arg7[%c0_20, %c0_21], %37 {strides = array<i32>} : memref<8x1xf32, #tpu.memory_space<vmem>>, vector<8x1xf32>,
    %c0_i32_22 = arith.constant 0 : i32
    %39 = arith.cmpi eq, %arg1, %c0_i32_22 : i32
    %40 = arith.extui %39 : i1 to i32
    %c0_i32_23 = arith.constant 0 : i32
    %41 = arith.cmpi ne, %40, %c0_i32_23 : i32
    scf.if %41 {
      %c-100_i32 = arith.constant -100 : i32
      %42 = vector.broadcast %c-100_i32 : i32 to vector<8x1xi32>
      %43 = arith.cmpi ne, %3, %42 : vector<8x1xi32>
      %c0_24 = arith.constant 0 : index
      %c0_25 = arith.constant 0 : index
      %44 = vector.load %arg5[%c0_24, %c0_25] : memref<8x1xf32, #tpu.memory_space<vmem>>, vector<8x1xf32>
      %c0_26 = arith.constant 0 : index
      %c0_27 = arith.constant 0 : index
      %45 = vector.load %arg6[%c0_26, %c0_27] : memref<8x1xf32, #tpu.memory_space<vmem>>, vector<8x1xf32>
      %46 = math.log %45 : vector<8x1xf32>
      %47 = arith.addf %44, %46 : vector<8x1xf32>
      %c0_28 = arith.constant 0 : index
      %c0_29 = arith.constant 0 : index
      %48 = vector.load %arg7[%c0_28, %c0_29] : memref<8x1xf32, #tpu.memory_space<vmem>>, vector<8x1xf32>
      %49 = arith.subf %47, %48 : vector<8x1xf32>
      %cst_30 = arith.constant 0.000000e+00 : f32
      %50 = vector.broadcast %cst_30 : f32 to vector<8x1xf32>
      %51 = arith.select %43, %49, %50 : vector<8x1xi1>, vector<8x1xf32>
      %c0_31 = arith.constant 0 : index
      %c0_32 = arith.constant 0 : index
      %52 = vector.load %arg4[%c0_31, %c0_32] : memref<8x1xf32, #tpu.memory_space<vmem>>, vector<8x1xf32>
      tpu.vector_store %arg4[%c0_31, %c0_32], %51 {strides = array<i32>} : memref<8x1xf32, #tpu.memory_space<vmem>>, vector<8x1xf32>,
    } else {
    }
    return
  }
  func.func @transform_0(%arg0: i32, %arg1: i32) -> (i32, i32) {
    %c0_i32 = arith.constant 0 : i32
    %c0_i32_0 = arith.constant 0 : i32
    return %arg0, %c0_i32 : i32, i32
  }
  func.func @transform_1(%arg0: i32, %arg1: i32) -> (i32, i32) {
    %c0_i32 = arith.constant 0 : i32
    return %arg0, %arg1 : i32, i32
  }
  func.func @transform_2(%arg0: i32, %arg1: i32) -> (i32, i32) {
    %c0_i32 = arith.constant 0 : i32
    %c0_i32_0 = arith.constant 0 : i32
    return %arg0, %c0_i32 : i32, i32
  }
}

</mosaic_0001>

<bundles_post_ra>
// kernel: tpu_custom_call.1
= control target key start
LH: loop header
LB: loop body
LE: loop exit
PB: predicated region body
PF: predicated region fallthrough
CT: control target
= control target key end

     0   :  { %v21_v0 = vlaneseq  ;;  %vm15_vm0 = vcmask 7168   ;;  %v89_v1 = vmov -inf   ;;  %v90_v5 = vmov 0   ;;  %s123_s1 = inlined_call_operand.vmem [shape: f32[8,32], index: 1, kind: input, shape index: {}]   ;;  %s124_s0 = inlined_call_operand.vmem [shape: s32[8,1], index: 0, kind: input, shape index: {}]   ;;  %s125_s2 = inlined_call_operand.vmem [shape: f32[8,1], index: 2, kind: output, shape index: {}]  }
   0x1   :  { %16 = vst.msk [vmem:[#allocation2] sm:$0xff] %vm15_vm0, %v89_v1  ;;  %v20_v2 = vld [vmem:[%s123_s1] sm:$0xff]  ;;  %81 = vset.pattern.permute.xlu0 %v90_v5  ;;  %82 = vset.pattern.permute.xlu1 %v90_v5  ;;  %v91_v6 = vmov 0.0  }
   0x2   :  { %v22_v3 = vand.u32 127, %v21_v0  ;;  %17 = vst.msk [vmem:[#allocation3] sm:$0xff] %vm15_vm0, %v91_v6  ;;  %v19_v7 = vld [vmem:[%s124_s0] sm:$0xff] }
   0x3   :  { %18 = vst.msk [vmem:[#allocation4] sm:$0xff] %vm15_vm0, %v91_v6  ;;  %52 = vperm.xlu1 %82, %v19_v7   ;;  %vm64_vm3 = vcmp.ne.s32.totalorder %v19_v7, 4294967196 }
   0x4   :  { %vm26_vm1 = vcmp.lt.s32.totalorder %v22_v3, 32 }
   0x5   :  { %v27_v4 = vsel %vm26_vm1, %v20_v2, -inf }
   0x6   :  { %28 = vmax.xlane.f32.xlu0 %v27_v4 }
   0x8   :  { %v30_v8 = vld [vmem:[#allocation2] sm:$0xff] }
   0x9   :  { %v43_v23 = vld [vmem:[#allocation3] sm:$0xff] }
   0xa   :  { %v55_v18 = vld [vmem:[#allocation4] sm:$0xff] }
  0x75   :  { %v53_v12 = vpop.permute.xlu1 %52 }
  0x76   :  { %vm54_vm2 = vcmp.eq.s32.totalorder %v22_v3, %v53_v12 }
  0x77   :  { %v56_v13 = vsel %vm54_vm2, %v27_v4, 0.0 }
  0x78   :  { %57 = vadd.xlane.f32.xlu2 %v56_v13 }
  0x79   :  { %v29_v9 = vpop.xlane.xlu0 %28 }
  0x7a   :  { %v31_v10 = vmax.f32 %v30_v8, %v29_v9 }
  0x7c   :  { %v32_v11 = vsub.f32 %v30_v8, %v31_v10  ;;  %50 = vst.msk [vmem:[#allocation2] sm:$0xff] %vm15_vm0, %v31_v10  ;;  %37 = vperm.xlu0 %81, %v31_v10  }
  0x7e   :  { %v33_v21 = vmul.f32 1.442695, %v32_v11 }
  0x83   :  { %v65_v30 = vld [vmem:[#allocation2] sm:$0xff] }
  0xeb   :  { %v58_v19 = vpop.xlane.xlu2 %57 }
  0xec   :  { %v59_v20 = vadd.f32 %v58_v19, %v55_v18 }
  0xee   :  { %v38_v14 = vpop.permute.xlu0 %37  ;;  %60 = vst.msk [vmem:[#allocation4] sm:$0xff] %vm15_vm0, %v59_v20 }
  0xef   :  { %v40_v15 = vsub.f32 %v27_v4, %v38_v14 }
  0xf1   :  { %v41_v16 = vmul.f32 1.442695, %v40_v15 }
  0xf3   :  { %83 = vpow2.f32 %v41_v16 }
  0xf4   :  { %85 = vpow2.f32 %v33_v21 }
  0xf5   :  { %v70_v31 = vld [vmem:[#allocation4] sm:$0xff] }
  0xf9   :  { %v84_v17 = vpop.eup %83 }
  0xfa   :  { %45 = vadd.xlane.f32.xlu1 %v84_v17  ;;  %v86_v22 = vpop.eup %85 }
  0xfb   :  { %v44_v24 = vmul.f32 %v86_v22, %v43_v23 }
 0x16d   :  { %v46_v25 = vpop.xlane.xlu1 %45 }
 0x16e   :  { %v47_v26 = vadd.f32 %v46_v25, %v44_v24 }
 0x170   :  { %49 = vst.msk [vmem:[#allocation3] sm:$0xff] %vm15_vm0, %v47_v26 }
 0x177   :  { %v66_v27 = vld [vmem:[#allocation3] sm:$0xff] }
 0x178   :  { %87 = vlog2.f32 %v66_v27 }
 0x17e   :  { %v88_v28 = vpop.eup %87 }
 0x17f   :  { %v68_v29 = vmul.f32 0.6931472, %v88_v28 }
 0x181   :  { %v69_v32 = vadd.f32 %v68_v29, %v65_v30 }
 0x183   :  { %v71_v33 = vsub.f32 %v69_v32, %v70_v31 }
 0x185   :  { %v72_v34 = vsel %vm64_vm3, %v71_v33, 0.0 }
 0x186   :  { %73 = vst.msk [vmem:[%s125_s2] sm:$0xff] %vm15_vm0, %v72_v34 }

</bundles_post_ra>
